<compile_context>
chip_gen: v7x
topology: tpu7x:2x2x1
jax: 0.10.0
libtpu: 0.0.40
codegen_flags: <defaults>
</compile_context>

<pallas_src>
from functools import partial

import jax
import jax.numpy as jnp
from jax.experimental import pallas as pl
from jax.experimental.pallas import tpu as pltpu


def _prompt_concat_kernel(emb_ref, ctx_ref, prompts_ref):
    # emb_ref    : (TC, seq_len, D) token embedding tile (prefix | old ctx rows | suffix)
    # ctx_ref    : (1,  n_ctx,  D)  layer-0 learnable context (same block every step)
    # prompts_ref: (TC, seq_len, D) output tile, HBM-aliased with emb
    tc, _, d = emb_ref.shape
    n_ctx = ctx_ref.shape[1]

    emb = emb_ref[...]
    # Cast folded into the kernel; broadcast ctx[0] across the TC classes.
    ctx_tile = jnp.broadcast_to(ctx_ref[...].astype(emb.dtype), (tc, n_ctx, d))

    # prompts = cat([prefix, ctx[0], suffix], dim=1), assembled in registers and
    # written back with a single full-tile (unmasked) store.
    prompts_ref[...] = jnp.concatenate(
        [emb[:, :1, :], ctx_tile, emb[:, 1 + n_ctx:, :]], axis=1
    )


def _pick_class_tile(n_cls, bytes_per_class, target_bytes=2 * 1024 * 1024, cap=128):
    """Largest divisor of n_cls whose block stays under ~target_bytes (per buffer)."""
    budget = max(1, target_bytes // max(1, bytes_per_class))
    budget = int(min(budget, cap, n_cls))
    for tc in range(budget, 0, -1):
        if n_cls % tc == 0:
            return tc
    return 1


@partial(jax.jit, static_argnames=("n_ctx",), donate_argnames=("embedding",))
def prompt_learner_forward(embedding, ctx, *, n_ctx):
    """embedding: (n_cls, seq_len, D) token embedding of the tokenized prompts
    (rows [1, 1+n_ctx) are overwritten by ctx[0]); ctx: (layer_p, n_ctx, D).

    Returns (prompts, ctx_expanded) matching PromptLearner.forward()."""
    n_cls, seq_len, ctx_dim = embedding.shape
    layer_p = ctx.shape[0]
    out_dtype = embedding.dtype

    tc = _pick_class_tile(n_cls, seq_len * ctx_dim * out_dtype.itemsize)

    grid_spec = pltpu.PrefetchScalarGridSpec(
        num_scalar_prefetch=0,
        grid=(n_cls // tc,),
        in_specs=[
            # TC classes per step; (seq_len, D) are full-extent so the
            # (8, 128) block constraint is satisfied for any config.
            pl.BlockSpec((tc, seq_len, ctx_dim), lambda i: (i, 0, 0)),
            # Only layer 0 of ctx is needed for the concat.
            pl.BlockSpec((1, n_ctx, ctx_dim), lambda i: (0, 0, 0)),
        ],
        out_specs=pl.BlockSpec((tc, seq_len, ctx_dim), lambda i: (i, 0, 0)),
    )

    prompts = pl.pallas_call(
        _prompt_concat_kernel,
        grid_spec=grid_spec,
        out_shape=jax.ShapeDtypeStruct((n_cls, seq_len, ctx_dim), out_dtype),
        # In-place update of the donated embedding buffer.
        input_output_aliases={0: 0},
        compiler_params=pltpu.CompilerParams(
            dimension_semantics=("parallel",)),
    )(embedding, ctx)

    # torch `.expand` is a zero-copy view; keep ctx in its native parameter
    # dtype and let XLA broadcast (materialized only because the caller
    # receives it as a concrete output).
    ctx_expanded = jnp.broadcast_to(
        ctx[None], (n_cls, layer_p, n_ctx, ctx_dim))
    return prompts, ctx_expanded


if __name__ == "__main__":
    # Small synthetic config consistent with PromptLearner.__init__:
    #   n_cls classes, n_ctx context tokens, layer_p prompted layers,
    #   ctx_dim embedding dim, tokenized sequence length seq_len.
    n_cls, n_ctx, layer_p, ctx_dim, seq_len = 4, 4, 3, 32, 16
    dtype = jnp.float32

    key = jax.random.PRNGKey(0)
    k_ctx, k_emb = jax.random.split(key)

    # nn.init.normal_(ctx_vectors, std=0.02)
    ctx = (0.02 * jax.random.normal(k_ctx, (layer_p, n_ctx, ctx_dim))).astype(dtype)

    # Stand-in for clip_model.token_embedding(tokenized_prompts).
    embedding = jax.random.normal(k_emb, (n_cls, seq_len, ctx_dim)).astype(dtype)

    # The module stores these slices; copy them (and the reference result)
    # before the embedding buffer is donated to the kernel.
    token_prefix = jnp.array(embedding[:, :1, :])           # (n_cls, 1, D)
    token_suffix = jnp.array(embedding[:, 1 + n_ctx:, :])   # (n_cls, n_suf, D)
    ref_prompts = jnp.concatenate(
        [token_prefix,
         jnp.broadcast_to(ctx[0][None], (n_cls, n_ctx, ctx_dim)).astype(dtype),
         token_suffix], axis=1)
    ref_ctx = jnp.broadcast_to(ctx[None], (n_cls, layer_p, n_ctx, ctx_dim))
    ref_prompts, ref_ctx = jax.block_until_ready((ref_prompts, ref_ctx))

    prompts, ctx_expanded = prompt_learner_forward(embedding, ctx, n_ctx=n_ctx)
    prompts, ctx_expanded = jax.block_until_ready((prompts, ctx_expanded))

    assert prompts.shape == (n_cls, seq_len, ctx_dim)
    assert ctx_expanded.shape == (n_cls, layer_p, n_ctx, ctx_dim)
    assert jnp.allclose(prompts, ref_prompts)
    assert jnp.allclose(ctx_expanded, ref_ctx)

    print("KERNEL_OK")
</pallas_src>

<mosaic_0001>
module attributes {stable_mosaic.version = 11 : i64} {
  func.func @_prompt_concat_kernel(%arg0: i32, %arg1: memref<4x16x32xf32, #tpu.memory_space<vmem>>, %arg2: memref<1x4x32xf32, #tpu.memory_space<vmem>>, %arg3: memref<4x16x32xf32, #tpu.memory_space<vmem>>) attributes {dimension_semantics = [#tpu.dimension_semantics<parallel>], iteration_bounds = array<i64: 1>, scalar_prefetch = 0 : i64, scratch_operands = 0 : i64, tpu.core_type = #tpu.core_type<tc>, window_params = [{transform_indices = @transform_0, window_bounds = array<i64: 4, 16, 32>}, {transform_indices = @transform_1, window_bounds = array<i64: 1, 4, 32>}, {transform_indices = @transform_2, window_bounds = array<i64: 4, 16, 32>}]} {
    %c0 = arith.constant 0 : index
    %c0_0 = arith.constant 0 : index
    %c0_1 = arith.constant 0 : index
    %0 = vector.load %arg1[%c0, %c0_0, %c0_1] : memref<4x16x32xf32, #tpu.memory_space<vmem>>, vector<4x16x32xf32>
    %c0_2 = arith.constant 0 : index
    %c0_3 = arith.constant 0 : index
    %c0_4 = arith.constant 0 : index
    %1 = vector.load %arg2[%c0_2, %c0_3, %c0_4] : memref<1x4x32xf32, #tpu.memory_space<vmem>>, vector<1x4x32xf32>
    %2 = vector.shape_cast %1 : vector<1x4x32xf32> to vector<1x4x32xf32>
    %3 = vector.broadcast %2 : vector<1x4x32xf32> to vector<4x4x32xf32>
    %4 = vector.extract_strided_slice %0 {offsets = [0, 0, 0], sizes = [4, 1, 32], strides = [1, 1, 1]} : vector<4x16x32xf32> to vector<4x1x32xf32>
    %5 = vector.extract_strided_slice %0 {offsets = [0, 5, 0], sizes = [4, 11, 32], strides = [1, 1, 1]} : vector<4x16x32xf32> to vector<4x11x32xf32>
    %6 = tpu.concatenate %4, %3, %5 in 1 : vector<4x1x32xf32>, vector<4x4x32xf32>, vector<4x11x32xf32> -> vector<4x16x32xf32>
    %c0_5 = arith.constant 0 : index
    %c0_6 = arith.constant 0 : index
    %c0_7 = arith.constant 0 : index
    %7 = vector.load %arg3[%c0_5, %c0_6, %c0_7] : memref<4x16x32xf32, #tpu.memory_space<vmem>>, vector<4x16x32xf32>
    tpu.vector_store %arg3[%c0_5, %c0_6, %c0_7], %6 {strides = array<i32>} : memref<4x16x32xf32, #tpu.memory_space<vmem>>, vector<4x16x32xf32>,
    return
  }
  func.func @transform_0(%arg0: i32) -> (i32, i32, i32) {
    %c0_i32 = arith.constant 0 : i32
    %c0_i32_0 = arith.constant 0 : i32
    %c0_i32_1 = arith.constant 0 : i32
    return %arg0, %c0_i32, %c0_i32_0 : i32, i32, i32
  }
  func.func @transform_1(%arg0: i32) -> (i32, i32, i32) {
    %c0_i32 = arith.constant 0 : i32
    %c0_i32_0 = arith.constant 0 : i32
    %c0_i32_1 = arith.constant 0 : i32
    %c0_i32_2 = arith.constant 0 : i32
    return %c0_i32, %c0_i32_0, %c0_i32_1 : i32, i32, i32
  }
  func.func @transform_2(%arg0: i32) -> (i32, i32, i32) {
    %c0_i32 = arith.constant 0 : i32
    %c0_i32_0 = arith.constant 0 : i32
    %c0_i32_1 = arith.constant 0 : i32
    return %arg0, %c0_i32, %c0_i32_0 : i32, i32, i32
  }
}

</mosaic_0001>

<bundles_post_ra>
// kernel: prompt_learner_forward.1
= control target key start
LH: loop header
LB: loop body
LE: loop exit
PB: predicated region body
PF: predicated region fallthrough
CT: control target
= control target key end

     0   :  { %7 = vsyncpa [#allocation3], 0  ;;  %s245_s0 = inlined_call_operand.hbm [shape: f32[4,16,32], index: 0, kind: input, shape index: {}, may-alias: {0,2}]   ;;  %s246_s1 = inlined_call_operand.hbm [shape: f32[3,4,32], index: 1, kind: input, shape index: {}]   ;;  %s247_s2 = inlined_call_operand.hbm [shape: f32[4,16,32], index: 2, kind: output, shape index: {}, may-alias: {0,2}]  }
   0x1   :  { %8 = vsyncpa [#allocation6], 0 }
   0x2   :  { %9 = vsyncpa [#allocation4], 0  ;;  %s164_s9 = smov [#allocation2]   ;;  %s92_s13 = scalar_lea.hbm %s245_s0, 1024 }
   0x3   :  { %s15_s10 = sshll.u32 %s164_s9, 4  ;;  %p93_p0 = scmp.ne.s32.totalorder %s245_s0, %s92_s13  ;;  %s16_s10 = int_to_ptr.vmem [resolvable:$true] %s15_s10 }
   0x4   :  { %p96_p1 = scmp.lt.u32.totalorder %s92_s13, %s245_s0 }
   0x6   :  { %p98_p2 = pnand %p96_p1, %p93_p0 }
   0x8   :  { %101 = shalt.err (!%p98_p2)
}
   0x9   :  { %s102_s18 = scalar_lea.vmem %s16_s10, 1024  ;;  %p107_p4 = scmp.lt.s32.totalorder %s16_s10, %s16_s10 }
   0xa   :  { %p103_p3 = scmp.ne.s32.totalorder %s16_s10, %s102_s18  ;;  %p108_p5 = scmp.lt.s32.totalorder %s102_s18, %s102_s18 }
   0xc   :  { %p109_p6 = por %p108_p5, %p107_p4 }
   0xe   :  { %p110_p7 = pnand %p109_p6, %p103_p3 }
  0x10   :  { %113 = shalt.err (!%p110_p7)
}
  0x11   :  { %s165_s19 = smov 128   ;;  %s166_s20 = smov 8  }
  0x12   :  { %21 = dma.hbm_to_vmem [thread:$0]  %s245_s0, 1024, %s16_s10, [#allocation3], %s165_s19, %s165_s19, %s166_s20  }
  0x13   :  { %s167_s23 = smov [#allocation5]   ;;  %s114_s27 = scalar_lea.hbm %s246_s1, 64 }
  0x14   :  { %s28_s24 = sshll.u32 %s167_s23, 4  ;;  %p115_p8 = scmp.ne.s32.totalorder %s246_s1, %s114_s27  ;;  %s29_s24 = int_to_ptr.vmem [resolvable:$true] %s28_s24 }
  0x15   :  { %s116_s4 = scalar_lea.hbm %s246_s1, 192  ;;  %p118_p10 = scmp.lt.u32.totalorder %s114_s27, %s246_s1 }
  0x16   :  { %p117_p9 = scmp.lt.u32.totalorder %s116_s4, %s114_s27 }
  0x18   :  { %p119_p11 = por %p118_p10, %p117_p9 }
  0x1a   :  { %p120_p12 = pnand %p119_p11, %p115_p8 }
  0x1c   :  { %123 = shalt.err (!%p120_p12)
}
  0x1d   :  { %s124_s0 = scalar_lea.vmem %s29_s24, 64  ;;  %p129_p0 = scmp.lt.s32.totalorder %s29_s24, %s29_s24 }
  0x1e   :  { %p125_p13 = scmp.ne.s32.totalorder %s29_s24, %s124_s0  ;;  %p130_p1 = scmp.lt.s32.totalorder %s124_s0, %s124_s0 }
  0x20   :  { %p131_p2 = por %p130_p1, %p129_p0 }
  0x22   :  { %p132_p3 = pnand %p131_p2, %p125_p13 }
  0x24   :  { %135 = shalt.err (!%p132_p3)
}
  0x25   :  { %31 = dma.hbm_to_vmem [thread:$0]  %s246_s1, 64, %s29_s24, [#allocation6]  }
  0x26   :  { %158 = dma.done.wait [#allocation3], 1024  }
  0x27   :  { %159 = vsyncadd [#allocation3], 4294966272 }
  0x28   :  { %160 = dma.done.wait [#allocation6], 64  }
  0x29   :  { %161 = vsyncadd [#allocation6], 4294967232  ;;  %vm60_vm0 = vcmask 261120   ;;  %v38_v0 = vld [vmem:[#allocation2] sm:$0xff]  ;;  %vm50_vm1 = vcmask 1040384   ;;  %v39_v2 = vld [vmem:[#allocation2 + $0x8] sm:$0xff] }
  0x2a   :  { %v46_v1 = vld [vmem:[#allocation5] sm:$0xf]  ;;  %s168_s9 = smov [#allocation7]   ;;  %vm55_vm2 = vcmask 1044480   ;;  %62 = vst.msk [vmem:[#allocation7 + $0x8] sm:$0xff] %vm60_vm0, %v39_v2  ;;  %v40_v4 = vld [vmem:[#allocation2 + $0x10] sm:$0xff] }
  0x2b   :  { %s74_s10 = sshll.u32 %s168_s9, 4  ;;  %v48_v3 = vrot.slane %v46_v1, 7  ;;  %v41_v5 = vld [vmem:[#allocation2 + $0x18] sm:$0xff]  ;;  %v42_v6 = vld [vmem:[#allocation2 + $0x20] sm:$0xff]  ;;  %v43_v7 = vld [vmem:[#allocation2 + $0x28] sm:$0xff]  ;;  %s75_s10 = int_to_ptr.vmem [resolvable:$true] %s74_s10 }
  0x2c   :  { %64 = vst.msk [vmem:[#allocation7 + $0x18] sm:$0xff] %vm60_vm0, %v41_v5  ;;  %v44_v8 = vld [vmem:[#allocation2 + $0x30] sm:$0xff]  ;;  %v45_v9 = vld [vmem:[#allocation2 + $0x38] sm:$0xff]  ;;  %66 = vst.msk [vmem:[#allocation7 + $0x28] sm:$0xff] %vm60_vm0, %v43_v7  ;;  %s136_s1 = scalar_lea.vmem %s75_s10, 1024  ;;  %p141_p5 = scmp.lt.s32.totalorder %s75_s10, %s75_s10 }
  0x2d   :  { %v51_v10 = vsel %vm50_vm1, %v38_v0, %v48_v3  ;;  %v52_v11 = vsel %vm50_vm1, %v40_v4, %v48_v3  ;;  %v53_v12 = vsel %vm50_vm1, %v42_v6, %v48_v3  ;;  %v54_v13 = vsel %vm50_vm1, %v44_v8, %v48_v3  ;;  %68 = vst.msk [vmem:[#allocation7 + $0x38] sm:$0xff] %vm60_vm0, %v45_v9  ;;  %p137_p4 = scmp.ne.s32.totalorder %s75_s10, %s136_s1  ;;  %p142_p6 = scmp.lt.s32.totalorder %s136_s1, %s136_s1 }
  0x2e   :  { %v56_v14 = vsel %vm55_vm2, %v51_v10, %v38_v0  ;;  %v57_v15 = vsel %vm55_vm2, %v52_v11, %v40_v4  ;;  %v58_v16 = vsel %vm55_vm2, %v53_v12, %v42_v6  ;;  %v59_v17 = vsel %vm55_vm2, %v54_v13, %v44_v8 }
  0x2f   :  { %61 = vst.msk [vmem:[#allocation7] sm:$0xff] %vm60_vm0, %v56_v14  ;;  %63 = vst.msk [vmem:[#allocation7 + $0x10] sm:$0xff] %vm60_vm0, %v57_v15  ;;  %p143_p7 = por %p142_p6, %p141_p5 }
  0x30   :  { %65 = vst.msk [vmem:[#allocation7 + $0x20] sm:$0xff] %vm60_vm0, %v58_v16  ;;  %67 = vst.msk [vmem:[#allocation7 + $0x30] sm:$0xff] %vm60_vm0, %v59_v17 }
  0x31   :  { %p144_p8 = pnand %p143_p7, %p137_p4 }
  0x33   :  { %147 = shalt.err (!%p144_p8)
}
  0x34   :  { %s148_s13 = scalar_lea.hbm %s247_s2, 1024 }
  0x35   :  { %p149_p9 = scmp.ne.s32.totalorder %s247_s2, %s148_s13  ;;  %p152_p10 = scmp.lt.u32.totalorder %s148_s13, %s247_s2 }
  0x37   :  { %p154_p11 = pnand %p152_p10, %p149_p9 }
  0x39   :  { %157 = shalt.err (!%p154_p11)
}
  0x3a   :  { %80 = dma.vmem_to_hbm [thread:$0]  %s75_s10, 1024, %s247_s2, [#allocation4], %s165_s19, %s165_s19, %s166_s20  }
  0x3b   :  { %162 = dma.done.wait [#allocation4], 1024  }
  0x3c   :  { %163 = vsyncadd [#allocation4], 4294966272 }
  0x3d   :  { %84 = vsyncpa [#allocation3], 1 }
  0x3e   :  { %85 = vsyncpa [#allocation6], 1 }
  0x3f   :  { %86 = vsyncpa [#allocation4], 1 }

</bundles_post_ra>
